<compile_context>
chip_gen: v5e
topology: v5e:2x2
jax: 0.10.0
libtpu: 0.0.40
codegen_flags: <defaults>
</compile_context>

<pallas_src>
import math
import functools

import jax
import jax.numpy as jnp
from jax.experimental import pallas as pl
from jax.experimental.pallas import tpu as pltpu


def _layernorm(x, w, b, eps=1e-5):
    # x: (T, C) f32, w/b: (1, C) f32
    mean = jnp.mean(x, axis=-1, keepdims=True)
    var = jnp.mean((x - mean) ** 2, axis=-1, keepdims=True)
    return (x - mean) * jax.lax.rsqrt(var + eps) * w + b


def _gelu_tanh(x):
    # GELU, tanh approximation (matches nn.GELU(approximate='tanh'))
    c = math.sqrt(2.0 / math.pi)
    return 0.5 * x * (1.0 + jnp.tanh(c * (x + 0.044715 * x * x * x)))


def block_kernel(x_ref,
                 ln1_w_ref, ln1_b_ref,
                 w_attn_ref, b_attn_ref,
                 w_cproj_ref, b_cproj_ref,
                 ln2_w_ref, ln2_b_ref,
                 w_fc_ref, b_fc_ref,
                 w_mproj_ref, b_mproj_ref,
                 out_ref,
                 *, n_head, t_tile, mlp_chunk):
    _, T, C = x_ref.shape
    H = n_head
    hd = C // H
    scale = 1.0 / math.sqrt(hd)
    bf = jnp.bfloat16
    f32 = jnp.float32

    x = x_ref[0]                                                # (T, C) f32

    # ---- ln_1 + fused QKV projection (bf16 MXU, f32 accumulate) ----
    h = _layernorm(x, ln1_w_ref[...], ln1_b_ref[...]).astype(bf)
    qkv = jnp.dot(h, w_attn_ref[...],
                  preferred_element_type=f32) + b_attn_ref[...]  # (T, 3C)

    def to_heads(z):                                            # (T, C) -> (H, T, hd)
        return jnp.transpose(z.reshape(T, H, hd), (1, 0, 2))

    # fold 1/sqrt(hd) into q before the bf16 cast: T*hd multiplies, not T*T
    q = to_heads(qkv[:, 0 * C:1 * C] * scale).astype(bf)
    k = to_heads(qkv[:, 1 * C:2 * C]).astype(bf)
    v = to_heads(qkv[:, 2 * C:3 * C]).astype(bf)

    # ---- flash-style causal attention over the H-batched head axis ----
    n_tiles = T // t_tile
    neg = jnp.float32(-1e30)
    # causal mask for the diagonal tile only (t_tile == tq == tkv)
    r = jax.lax.broadcasted_iota(jnp.int32, (t_tile, t_tile), 0)
    c = jax.lax.broadcasted_iota(jnp.int32, (t_tile, t_tile), 1)
    diag_mask = (r >= c)[None, :, :]                            # (1, tq, tkv)

    y_tiles = []
    for qi in range(n_tiles):
        q_t = q[:, qi * t_tile:(qi + 1) * t_tile, :]            # (H, tq, hd)
        m = jnp.full((H, t_tile, 1), -jnp.inf, f32)
        l = jnp.zeros((H, t_tile, 1), f32)
        acc = jnp.zeros((H, t_tile, hd), f32)
        for ki in range(qi + 1):                                # causal tile skipping
            k_t = k[:, ki * t_tile:(ki + 1) * t_tile, :]
            v_t = v[:, ki * t_tile:(ki + 1) * t_tile, :]
            s = jnp.einsum('hqd,hkd->hqk', q_t, k_t,
                           preferred_element_type=f32)          # (H, tq, tkv)
            if ki == qi:                                        # mask only on diagonal
                s = jnp.where(diag_mask, s, neg)
            m_new = jnp.maximum(m, jnp.max(s, axis=-1, keepdims=True))
            alpha = jnp.exp(m - m_new)
            p = jnp.exp(s - m_new)
            l = alpha * l + jnp.sum(p, axis=-1, keepdims=True)
            acc = alpha * acc + jnp.einsum('hqk,hkd->hqd', p.astype(bf), v_t,
                                           preferred_element_type=f32)
            m = m_new
        # deferred normalization: EUP reciprocal applied to (tq, hd), not (tq, tkv)
        y_tiles.append(acc * pl.reciprocal(l, approx=True))
    y = jnp.concatenate(y_tiles, axis=1) if n_tiles > 1 else y_tiles[0]   # (H, T, hd)
    y = jnp.transpose(y, (1, 0, 2)).reshape(T, C)

    attn_out = jnp.dot(y.astype(bf), w_cproj_ref[...],
                       preferred_element_type=f32) + b_cproj_ref[...]
    x1 = x + attn_out                                           # residual 1

    # ---- ln_2 + MLP, hidden dim chunked so (T, 4C) f32 is never resident ----
    h2 = _layernorm(x1, ln2_w_ref[...], ln2_b_ref[...]).astype(bf)
    f4 = w_fc_ref.shape[1]
    n_chunks = f4 // mlp_chunk
    m_acc = jnp.zeros((T, C), f32)
    for j in range(n_chunks):
        lo = j * mlp_chunk
        f = jnp.dot(h2, w_fc_ref[:, lo:lo + mlp_chunk],
                    preferred_element_type=f32) + b_fc_ref[:, lo:lo + mlp_chunk]
        f = _gelu_tanh(f)
        m_acc = m_acc + jnp.dot(f.astype(bf), w_mproj_ref[lo:lo + mlp_chunk, :],
                                preferred_element_type=f32)

    out_ref[0] = x1 + m_acc + b_mproj_ref[...]                  # residual 2


def _pick_tile(T, pref=256):
    if T <= pref:
        return T
    for t in (pref, 128, 64, 32, 16, 8):
        if T % t == 0:
            return t
    return T


def gpt2_block(x, params, n_head):
    B, T, C = x.shape
    (ln1_w, ln1_b, w_attn, b_attn, w_cproj, b_cproj,
     ln2_w, ln2_b, w_fc, b_fc, w_mproj, b_mproj) = params
    bf = jnp.bfloat16
    hd = C // n_head
    f4 = w_fc.shape[1]

    t_tile = _pick_tile(T)                                  # 256 at T=1024, T at toy size
    mlp_chunk = f4 if f4 <= 512 else (512 if f4 % 512 == 0 else f4)

    # Cast weights to bf16 once here; under jit this is hoisted out of the per-step
    # path so the kernel always gets MXU-native operands (halves weight HBM traffic).
    w_attn_b = w_attn.astype(bf)
    w_cproj_b = w_cproj.astype(bf)
    w_fc_b = w_fc.astype(bf)
    w_mproj_b = w_mproj.astype(bf)

    def full_spec(a):
        shp = a.shape
        return pl.BlockSpec(shp, lambda b: (0,) * len(shp))   # resident across grid

    kernel = functools.partial(block_kernel, n_head=n_head,
                               t_tile=t_tile, mlp_chunk=mlp_chunk)

    # cost hint for XLA's scheduler around the custom call
    flops = 24 * B * T * C * C + 4 * B * T * T * C
    transcendentals = B * T * f4 + B * n_head * T * T
    bytes_accessed = 2 * B * T * C * 4 + 12 * C * C * 2 + 12 * C * 4

    # per-step VMEM estimate (weights + double-buffered x/out + live activations)
    est = (12 * C * C * 2                       # bf16 weights
           + 2 * 2 * T * C * 4                  # double-buffered x & out (f32)
           + T * 3 * C * 4 + 3 * T * C * 2      # qkv f32 + q/k/v bf16
           + n_head * t_tile * t_tile * 4       # score tile
           + n_head * T * hd * 4                # attention output
           + T * mlp_chunk * 4                  # fc chunk
           + 6 * T * C * 4)                     # misc f32 temporaries
    vmem_limit = int(min(max(2 * est, 32 * 1024 * 1024), 96 * 1024 * 1024))

    out = pl.pallas_call(
        kernel,
        out_shape=jax.ShapeDtypeStruct((B, T, C), jnp.float32),
        grid=(B,),
        in_specs=[
            pl.BlockSpec((1, T, C), lambda b: (b, 0, 0)),
            full_spec(ln1_w), full_spec(ln1_b),
            full_spec(w_attn_b), full_spec(b_attn),
            full_spec(w_cproj_b), full_spec(b_cproj),
            full_spec(ln2_w), full_spec(ln2_b),
            full_spec(w_fc_b), full_spec(b_fc),
            full_spec(w_mproj_b), full_spec(b_mproj),
        ],
        out_specs=pl.BlockSpec((1, T, C), lambda b: (b, 0, 0)),
        compiler_params=pltpu.CompilerParams(
            dimension_semantics=("parallel",),
            vmem_limit_bytes=vmem_limit),
        cost_estimate=pl.CostEstimate(flops=flops,
                                      transcendentals=transcendentals,
                                      bytes_accessed=bytes_accessed),
    )(x,
      ln1_w, ln1_b, w_attn_b, b_attn, w_cproj_b, b_cproj,
      ln2_w, ln2_b, w_fc_b, b_fc, w_mproj_b, b_mproj)
    return out


# ---- pure-JAX f32 reference for correctness check ----
def reference_block(x, params, n_head):
    (ln1_w, ln1_b, w_attn, b_attn, w_cproj, b_cproj,
     ln2_w, ln2_b, w_fc, b_fc, w_mproj, b_mproj) = params
    B, T, C = x.shape
    hd = C // n_head

    def ln(v, w, b):
        mu = jnp.mean(v, -1, keepdims=True)
        var = jnp.mean((v - mu) ** 2, -1, keepdims=True)
        return (v - mu) / jnp.sqrt(var + 1e-5) * w + b

    h = ln(x, ln1_w, ln1_b)
    qkv = h @ w_attn + b_attn
    q, k, v = jnp.split(qkv, 3, axis=-1)
    q = q.reshape(B, T, n_head, hd).transpose(0, 2, 1, 3)
    k = k.reshape(B, T, n_head, hd).transpose(0, 2, 1, 3)
    v = v.reshape(B, T, n_head, hd).transpose(0, 2, 1, 3)
    s = jnp.einsum('bhqd,bhkd->bhqk', q, k) / math.sqrt(hd)
    mask = jnp.tril(jnp.ones((T, T), bool))
    s = jnp.where(mask, s, -1e30)
    p = jax.nn.softmax(s, axis=-1)
    y = jnp.einsum('bhqk,bhkd->bhqd', p, v).transpose(0, 2, 1, 3).reshape(B, T, C)
    y = y @ w_cproj + b_cproj
    x1 = x + y
    h2 = ln(x1, ln2_w, ln2_b)
    f = h2 @ w_fc + b_fc
    c = math.sqrt(2.0 / math.pi)
    f = 0.5 * f * (1.0 + jnp.tanh(c * (f + 0.044715 * f ** 3)))
    return x1 + (f @ w_mproj + b_mproj)


if __name__ == "__main__":
    # small config consistent with the module: n_embd=32, n_head=4, seq=8, batch=2
    Bsz, T, C, n_head = 2, 8, 32, 4

    key = jax.random.PRNGKey(0)
    ks = jax.random.split(key, 8)
    std = 0.02
    x = jax.random.normal(ks[0], (Bsz, T, C), jnp.float32)

    params = (
        jnp.ones((1, C), jnp.float32),                                   # ln_1 weight
        jnp.zeros((1, C), jnp.float32),                                  # ln_1 bias
        jax.random.normal(ks[1], (C, 3 * C), jnp.float32) * std,         # c_attn W
        jax.random.normal(ks[2], (1, 3 * C), jnp.float32) * std,         # c_attn b
        jax.random.normal(ks[3], (C, C), jnp.float32) * std,             # attn c_proj W
        jnp.zeros((1, C), jnp.float32),                                  # attn c_proj b
        jnp.ones((1, C), jnp.float32),                                   # ln_2 weight
        jnp.zeros((1, C), jnp.float32),                                  # ln_2 bias
        jax.random.normal(ks[4], (C, 4 * C), jnp.float32) * std,         # c_fc W
        jax.random.normal(ks[5], (1, 4 * C), jnp.float32) * std,         # c_fc b
        jax.random.normal(ks[6], (4 * C, C), jnp.float32) * std,         # mlp c_proj W
        jnp.zeros((1, C), jnp.float32),                                  # mlp c_proj b
    )

    fn = jax.jit(functools.partial(gpt2_block, n_head=n_head))
    out = fn(x, params)
    out = jax.block_until_ready(out)

    ref = reference_block(x, params, n_head)
    assert out.shape == (Bsz, T, C)
    # tolerance loosened vs. pure f32: bf16 matmul operands (f32 accumulation) and
    # the approx EUP reciprocal in the deferred softmax normalization.
    max_err = jnp.max(jnp.abs(out - ref))
    assert jnp.allclose(out, ref, rtol=2e-2, atol=2e-2), f"max err {max_err}"

    print("KERNEL_OK")
</pallas_src>

<mosaic_0001>
module attributes {stable_mosaic.version = 11 : i64} {
  func.func @block_kernel(%arg0: i32, %arg1: memref<1x8x32xf32, #tpu.memory_space<vmem>>, %arg2: memref<1x32xf32, #tpu.memory_space<vmem>>, %arg3: memref<1x32xf32, #tpu.memory_space<vmem>>, %arg4: memref<32x96xbf16, #tpu.memory_space<vmem>>, %arg5: memref<1x96xf32, #tpu.memory_space<vmem>>, %arg6: memref<32x32xbf16, #tpu.memory_space<vmem>>, %arg7: memref<1x32xf32, #tpu.memory_space<vmem>>, %arg8: memref<1x32xf32, #tpu.memory_space<vmem>>, %arg9: memref<1x32xf32, #tpu.memory_space<vmem>>, %arg10: memref<32x128xbf16, #tpu.memory_space<vmem>>, %arg11: memref<1x128xf32, #tpu.memory_space<vmem>>, %arg12: memref<128x32xbf16, #tpu.memory_space<vmem>>, %arg13: memref<1x32xf32, #tpu.memory_space<vmem>>, %arg14: memref<1x8x32xf32, #tpu.memory_space<vmem>>) attributes {dimension_semantics = [#tpu.dimension_semantics<parallel>], iteration_bounds = array<i64: 2>, scalar_prefetch = 0 : i64, scratch_operands = 0 : i64, tpu.core_type = #tpu.core_type<tc>, window_params = [{transform_indices = @transform_0, window_bounds = array<i64: 1, 8, 32>}, {pipeline_mode = #tpu.pipeline_mode<synchronous>, transform_indices = @transform_1, window_bounds = array<i64: 1, 32>}, {pipeline_mode = #tpu.pipeline_mode<synchronous>, transform_indices = @transform_2, window_bounds = array<i64: 1, 32>}, {pipeline_mode = #tpu.pipeline_mode<synchronous>, transform_indices = @transform_3, window_bounds = array<i64: 32, 96>}, {pipeline_mode = #tpu.pipeline_mode<synchronous>, transform_indices = @transform_4, window_bounds = array<i64: 1, 96>}, {pipeline_mode = #tpu.pipeline_mode<synchronous>, transform_indices = @transform_5, window_bounds = array<i64: 32, 32>}, {pipeline_mode = #tpu.pipeline_mode<synchronous>, transform_indices = @transform_6, window_bounds = array<i64: 1, 32>}, {pipeline_mode = #tpu.pipeline_mode<synchronous>, transform_indices = @transform_7, window_bounds = array<i64: 1, 32>}, {pipeline_mode = #tpu.pipeline_mode<synchronous>, transform_indices = @transform_8, window_bounds = array<i64: 1, 32>}, {pipeline_mode = #tpu.pipeline_mode<synchronous>, transform_indices = @transform_9, window_bounds = array<i64: 32, 128>}, {pipeline_mode = #tpu.pipeline_mode<synchronous>, transform_indices = @transform_10, window_bounds = array<i64: 1, 128>}, {pipeline_mode = #tpu.pipeline_mode<synchronous>, transform_indices = @transform_11, window_bounds = array<i64: 128, 32>}, {pipeline_mode = #tpu.pipeline_mode<synchronous>, transform_indices = @transform_12, window_bounds = array<i64: 1, 32>}, {transform_indices = @transform_13, window_bounds = array<i64: 1, 8, 32>}]} {
    %c0 = arith.constant 0 : index
    %c0_0 = arith.constant 0 : index
    %c0_1 = arith.constant 0 : index
    %0 = vector.load %arg1[%c0, %c0_0, %c0_1] : memref<1x8x32xf32, #tpu.memory_space<vmem>>, vector<1x8x32xf32>
    %1 = vector.shape_cast %0 : vector<1x8x32xf32> to vector<8x32xf32>
    %c0_2 = arith.constant 0 : index
    %c0_3 = arith.constant 0 : index
    %2 = vector.load %arg2[%c0_2, %c0_3] : memref<1x32xf32, #tpu.memory_space<vmem>>, vector<1x32xf32>
    %c0_4 = arith.constant 0 : index
    %c0_5 = arith.constant 0 : index
    %3 = vector.load %arg3[%c0_4, %c0_5] : memref<1x32xf32, #tpu.memory_space<vmem>>, vector<1x32xf32>
    %cst = arith.constant dense<0.000000e+00> : vector<8xf32>
    %4 = vector.multi_reduction <add>, %1, %cst [1] : vector<8x32xf32> to vector<8xf32>
    %5 = vector.shape_cast %4 : vector<8xf32> to vector<8x1xf32>
    %cst_6 = arith.constant 3.200000e+01 : f32
    %6 = vector.broadcast %cst_6 : f32 to vector<8x1xf32>
    %7 = arith.divf %5, %6 : vector<8x1xf32>
    %8 = vector.broadcast %7 : vector<8x1xf32> to vector<8x32xf32>
    %9 = arith.subf %1, %8 : vector<8x32xf32>
    %10 = arith.mulf %9, %9 : vector<8x32xf32>
    %cst_7 = arith.constant dense<0.000000e+00> : vector<8xf32>
    %11 = vector.multi_reduction <add>, %10, %cst_7 [1] : vector<8x32xf32> to vector<8xf32>
    %12 = vector.shape_cast %11 : vector<8xf32> to vector<8x1xf32>
    %cst_8 = arith.constant 3.200000e+01 : f32
    %13 = vector.broadcast %cst_8 : f32 to vector<8x1xf32>
    %14 = arith.divf %12, %13 : vector<8x1xf32>
    %15 = vector.broadcast %7 : vector<8x1xf32> to vector<8x32xf32>
    %16 = arith.subf %1, %15 : vector<8x32xf32>
    %cst_9 = arith.constant 9.99999974E-6 : f32
    %17 = vector.broadcast %cst_9 : f32 to vector<8x1xf32>
    %18 = arith.addf %14, %17 : vector<8x1xf32>
    %19 = math.rsqrt %18 : vector<8x1xf32>
    %20 = vector.broadcast %19 : vector<8x1xf32> to vector<8x32xf32>
    %21 = arith.mulf %16, %20 : vector<8x32xf32>
    %22 = vector.broadcast %2 : vector<1x32xf32> to vector<8x32xf32>
    %23 = arith.mulf %21, %22 : vector<8x32xf32>
    %24 = vector.broadcast %3 : vector<1x32xf32> to vector<8x32xf32>
    %25 = arith.addf %23, %24 : vector<8x32xf32>
    %26 = arith.truncf %25 : vector<8x32xf32> to vector<8x32xbf16>
    %c0_10 = arith.constant 0 : index
    %c0_11 = arith.constant 0 : index
    %27 = vector.load %arg4[%c0_10, %c0_11] : memref<32x96xbf16, #tpu.memory_space<vmem>>, vector<32x96xbf16>
    %cst_12 = arith.constant dense<0.000000e+00> : vector<8x96xf32>
    %28 = tpu.matmul %26, %27, %cst_12 {dimension_numbers = #tpu.dot_dimension_numbers<[1], [0], [0], [1], [0, 0, 1, 1], [], []>} : vector<8x32xbf16>, vector<32x96xbf16>, vector<8x96xf32> -> vector<8x96xf32>
    %c0_13 = arith.constant 0 : index
    %c0_14 = arith.constant 0 : index
    %29 = vector.load %arg5[%c0_13, %c0_14] : memref<1x96xf32, #tpu.memory_space<vmem>>, vector<1x96xf32>
    %30 = vector.broadcast %29 : vector<1x96xf32> to vector<8x96xf32>
    %31 = arith.addf %28, %30 : vector<8x96xf32>
    %32 = vector.extract_strided_slice %31 {offsets = [0, 0], sizes = [8, 32], strides = [1, 1]} : vector<8x96xf32> to vector<8x32xf32>
    %cst_15 = arith.constant 0.353553385 : f32
    %33 = vector.broadcast %cst_15 : f32 to vector<8x32xf32>
    %34 = arith.mulf %32, %33 : vector<8x32xf32>
    %35 = vector.shape_cast %34 : vector<8x32xf32> to vector<8x4x8xf32>
    %36 = tpu.transpose %35, [1, 0, 2] : vector<8x4x8xf32> -> vector<4x8x8xf32>
    %37 = arith.truncf %36 : vector<4x8x8xf32> to vector<4x8x8xbf16>
    %38 = vector.extract_strided_slice %31 {offsets = [0, 32], sizes = [8, 32], strides = [1, 1]} : vector<8x96xf32> to vector<8x32xf32>
    %39 = vector.shape_cast %38 : vector<8x32xf32> to vector<8x4x8xf32>
    %40 = tpu.transpose %39, [1, 0, 2] : vector<8x4x8xf32> -> vector<4x8x8xf32>
    %41 = arith.truncf %40 : vector<4x8x8xf32> to vector<4x8x8xbf16>
    %42 = vector.extract_strided_slice %31 {offsets = [0, 64], sizes = [8, 32], strides = [1, 1]} : vector<8x96xf32> to vector<8x32xf32>
    %43 = vector.shape_cast %42 : vector<8x32xf32> to vector<8x4x8xf32>
    %44 = tpu.transpose %43, [1, 0, 2] : vector<8x4x8xf32> -> vector<4x8x8xf32>
    %45 = arith.truncf %44 : vector<4x8x8xf32> to vector<4x8x8xbf16>
    %46 = tpu.iota {dimensions = array<i32: 0>} : vector<8x8xi32>
    %47 = tpu.iota {dimensions = array<i32: 1>} : vector<8x8xi32>
    %48 = arith.cmpi sge, %46, %47 : vector<8x8xi32>
    %49 = vector.shape_cast %48 : vector<8x8xi1> to vector<1x8x8xi1>
    %cst_16 = arith.constant 0xFF800000 : f32
    %50 = vector.broadcast %cst_16 : f32 to vector<4x8x1xf32>
    %cst_17 = arith.constant 0.000000e+00 : f32
    %51 = vector.broadcast %cst_17 : f32 to vector<4x8x1xf32>
    %cst_18 = arith.constant 0.000000e+00 : f32
    %52 = vector.broadcast %cst_18 : f32 to vector<4x8x8xf32>
    "tpu.trace_start"() <{level = 10 : i32, message = "hqd,hkd->hqk"}> : () -> ()
    %cst_19 = arith.constant dense<0.000000e+00> : vector<4x8x8xf32>
    %53 = tpu.matmul %37, %41, %cst_19 {dimension_numbers = #tpu.dot_dimension_numbers<[2], [2], [1], [1], [0, 0, 0, 1, 1, 1], [0], [0]>} : vector<4x8x8xbf16>, vector<4x8x8xbf16>, vector<4x8x8xf32> -> vector<4x8x8xf32>
    %cst_20 = arith.constant -1.000000e+30 : f32
    "tpu.trace_stop"() : () -> ()
    %54 = vector.shape_cast %49 : vector<1x8x8xi1> to vector<1x8x8xi1>
    %55 = vector.broadcast %54 : vector<1x8x8xi1> to vector<4x8x8xi1>
    %56 = vector.broadcast %cst_20 : f32 to vector<4x8x8xf32>
    %57 = arith.select %55, %53, %56 : vector<4x8x8xi1>, vector<4x8x8xf32>
    %cst_21 = arith.constant dense<0xFF800000> : vector<4x8xf32>
    %58 = vector.multi_reduction <maximumf>, %57, %cst_21 [2] : vector<4x8x8xf32> to vector<4x8xf32>
    %59 = vector.shape_cast %58 : vector<4x8xf32> to vector<4x8x1xf32>
    %60 = arith.maximumf %50, %59 : vector<4x8x1xf32>
    %61 = arith.subf %50, %60 : vector<4x8x1xf32>
    %62 = math.exp %61 : vector<4x8x1xf32>
    %63 = vector.broadcast %60 : vector<4x8x1xf32> to vector<4x8x8xf32>
    %64 = arith.subf %57, %63 : vector<4x8x8xf32>
    %65 = math.exp %64 : vector<4x8x8xf32>
    %66 = arith.mulf %62, %51 : vector<4x8x1xf32>
    %cst_22 = arith.constant dense<0.000000e+00> : vector<4x8xf32>
    %67 = vector.multi_reduction <add>, %65, %cst_22 [2] : vector<4x8x8xf32> to vector<4x8xf32>
    %68 = vector.shape_cast %67 : vector<4x8xf32> to vector<4x8x1xf32>
    %69 = arith.addf %66, %68 : vector<4x8x1xf32>
    %70 = vector.broadcast %62 : vector<4x8x1xf32> to vector<4x8x8xf32>
    %71 = arith.mulf %70, %52 : vector<4x8x8xf32>
    %72 = arith.truncf %65 : vector<4x8x8xf32> to vector<4x8x8xbf16>
    "tpu.trace_start"() <{level = 10 : i32, message = "hqk,hkd->hqd"}> : () -> ()
    %cst_23 = arith.constant dense<0.000000e+00> : vector<4x8x8xf32>
    %73 = tpu.matmul %72, %45, %cst_23 {dimension_numbers = #tpu.dot_dimension_numbers<[2], [1], [1], [2], [0, 0, 0, 1, 1, 2], [0], [0]>} : vector<4x8x8xbf16>, vector<4x8x8xbf16>, vector<4x8x8xf32> -> vector<4x8x8xf32>
    "tpu.trace_stop"() : () -> ()
    %74 = arith.addf %71, %73 : vector<4x8x8xf32>
    %75 = tpu.reciprocal %69 {approx = true} : vector<4x8x1xf32> -> vector<4x8x1xf32>
    %76 = vector.broadcast %75 : vector<4x8x1xf32> to vector<4x8x8xf32>
    %77 = arith.mulf %74, %76 : vector<4x8x8xf32>
    %78 = tpu.transpose %77, [1, 0, 2] : vector<4x8x8xf32> -> vector<8x4x8xf32>
    %79 = vector.shape_cast %78 : vector<8x4x8xf32> to vector<8x32xf32>
    %80 = arith.truncf %79 : vector<8x32xf32> to vector<8x32xbf16>
    %c0_24 = arith.constant 0 : index
    %c0_25 = arith.constant 0 : index
    %81 = vector.load %arg6[%c0_24, %c0_25] : memref<32x32xbf16, #tpu.memory_space<vmem>>, vector<32x32xbf16>
    %cst_26 = arith.constant dense<0.000000e+00> : vector<8x32xf32>
    %82 = tpu.matmul %80, %81, %cst_26 {dimension_numbers = #tpu.dot_dimension_numbers<[1], [0], [0], [1], [0, 0, 1, 1], [], []>} : vector<8x32xbf16>, vector<32x32xbf16>, vector<8x32xf32> -> vector<8x32xf32>
    %c0_27 = arith.constant 0 : index
    %c0_28 = arith.constant 0 : index
    %83 = vector.load %arg7[%c0_27, %c0_28] : memref<1x32xf32, #tpu.memory_space<vmem>>, vector<1x32xf32>
    %84 = vector.broadcast %83 : vector<1x32xf32> to vector<8x32xf32>
    %85 = arith.addf %82, %84 : vector<8x32xf32>
    %86 = arith.addf %1, %85 : vector<8x32xf32>
    %c0_29 = arith.constant 0 : index
    %c0_30 = arith.constant 0 : index
    %87 = vector.load %arg8[%c0_29, %c0_30] : memref<1x32xf32, #tpu.memory_space<vmem>>, vector<1x32xf32>
    %c0_31 = arith.constant 0 : index
    %c0_32 = arith.constant 0 : index
    %88 = vector.load %arg9[%c0_31, %c0_32] : memref<1x32xf32, #tpu.memory_space<vmem>>, vector<1x32xf32>
    %cst_33 = arith.constant dense<0.000000e+00> : vector<8xf32>
    %89 = vector.multi_reduction <add>, %86, %cst_33 [1] : vector<8x32xf32> to vector<8xf32>
    %90 = vector.shape_cast %89 : vector<8xf32> to vector<8x1xf32>
    %cst_34 = arith.constant 3.200000e+01 : f32
    %91 = vector.broadcast %cst_34 : f32 to vector<8x1xf32>
    %92 = arith.divf %90, %91 : vector<8x1xf32>
    %93 = vector.broadcast %92 : vector<8x1xf32> to vector<8x32xf32>
    %94 = arith.subf %86, %93 : vector<8x32xf32>
    %95 = arith.mulf %94, %94 : vector<8x32xf32>
    %cst_35 = arith.constant dense<0.000000e+00> : vector<8xf32>
    %96 = vector.multi_reduction <add>, %95, %cst_35 [1] : vector<8x32xf32> to vector<8xf32>
    %97 = vector.shape_cast %96 : vector<8xf32> to vector<8x1xf32>
    %cst_36 = arith.constant 3.200000e+01 : f32
    %98 = vector.broadcast %cst_36 : f32 to vector<8x1xf32>
    %99 = arith.divf %97, %98 : vector<8x1xf32>
    %100 = vector.broadcast %92 : vector<8x1xf32> to vector<8x32xf32>
    %101 = arith.subf %86, %100 : vector<8x32xf32>
    %cst_37 = arith.constant 9.99999974E-6 : f32
    %102 = vector.broadcast %cst_37 : f32 to vector<8x1xf32>
    %103 = arith.addf %99, %102 : vector<8x1xf32>
    %104 = math.rsqrt %103 : vector<8x1xf32>
    %105 = vector.broadcast %104 : vector<8x1xf32> to vector<8x32xf32>
    %106 = arith.mulf %101, %105 : vector<8x32xf32>
    %107 = vector.broadcast %87 : vector<1x32xf32> to vector<8x32xf32>
    %108 = arith.mulf %106, %107 : vector<8x32xf32>
    %109 = vector.broadcast %88 : vector<1x32xf32> to vector<8x32xf32>
    %110 = arith.addf %108, %109 : vector<8x32xf32>
    %111 = arith.truncf %110 : vector<8x32xf32> to vector<8x32xbf16>
    %cst_38 = arith.constant 0.000000e+00 : f32
    %112 = vector.broadcast %cst_38 : f32 to vector<8x32xf32>
    %c0_39 = arith.constant 0 : index
    %c0_40 = arith.constant 0 : index
    %113 = vector.load %arg10[%c0_39, %c0_40] : memref<32x128xbf16, #tpu.memory_space<vmem>>, vector<32x128xbf16>
    %cst_41 = arith.constant dense<0.000000e+00> : vector<8x128xf32>
    %114 = tpu.matmul %111, %113, %cst_41 {dimension_numbers = #tpu.dot_dimension_numbers<[1], [0], [0], [1], [0, 0, 1, 1], [], []>} : vector<8x32xbf16>, vector<32x128xbf16>, vector<8x128xf32> -> vector<8x128xf32>
    %c0_42 = arith.constant 0 : index
    %c0_43 = arith.constant 0 : index
    %115 = vector.load %arg11[%c0_42, %c0_43] : memref<1x128xf32, #tpu.memory_space<vmem>>, vector<1x128xf32>
    %116 = vector.broadcast %115 : vector<1x128xf32> to vector<8x128xf32>
    %117 = arith.addf %114, %116 : vector<8x128xf32>
    %cst_44 = arith.constant 5.000000e-01 : f32
    %118 = vector.broadcast %cst_44 : f32 to vector<8x128xf32>
    %119 = arith.mulf %118, %117 : vector<8x128xf32>
    %cst_45 = arith.constant 4.471500e-02 : f32
    %120 = vector.broadcast %cst_45 : f32 to vector<8x128xf32>
    %121 = arith.mulf %120, %117 : vector<8x128xf32>
    %122 = arith.mulf %121, %117 : vector<8x128xf32>
    %123 = arith.mulf %122, %117 : vector<8x128xf32>
    %124 = arith.addf %117, %123 : vector<8x128xf32>
    %cst_46 = arith.constant 0.797884583 : f32
    %125 = vector.broadcast %cst_46 : f32 to vector<8x128xf32>
    %126 = arith.mulf %125, %124 : vector<8x128xf32>
    %127 = math.tanh %126 : vector<8x128xf32>
    %cst_47 = arith.constant 1.000000e+00 : f32
    %128 = vector.broadcast %cst_47 : f32 to vector<8x128xf32>
    %129 = arith.addf %128, %127 : vector<8x128xf32>
    %130 = arith.mulf %119, %129 : vector<8x128xf32>
    %131 = arith.truncf %130 : vector<8x128xf32> to vector<8x128xbf16>
    %c0_48 = arith.constant 0 : index
    %c0_49 = arith.constant 0 : index
    %132 = vector.load %arg12[%c0_48, %c0_49] : memref<128x32xbf16, #tpu.memory_space<vmem>>, vector<128x32xbf16>
    %cst_50 = arith.constant dense<0.000000e+00> : vector<8x32xf32>
    %133 = tpu.matmul %131, %132, %cst_50 {dimension_numbers = #tpu.dot_dimension_numbers<[1], [0], [0], [1], [0, 0, 1, 1], [], []>} : vector<8x128xbf16>, vector<128x32xbf16>, vector<8x32xf32> -> vector<8x32xf32>
    %134 = arith.addf %112, %133 : vector<8x32xf32>
    %135 = arith.addf %86, %134 : vector<8x32xf32>
    %c0_51 = arith.constant 0 : index
    %c0_52 = arith.constant 0 : index
    %136 = vector.load %arg13[%c0_51, %c0_52] : memref<1x32xf32, #tpu.memory_space<vmem>>, vector<1x32xf32>
    %137 = vector.broadcast %136 : vector<1x32xf32> to vector<8x32xf32>
    %138 = arith.addf %135, %137 : vector<8x32xf32>
    %c0_53 = arith.constant 0 : index
    %c0_54 = arith.constant 0 : index
    %c0_55 = arith.constant 0 : index
    %139 = vector.load %arg14[%c0_53, %c0_54, %c0_55] : memref<1x8x32xf32, #tpu.memory_space<vmem>>, vector<1x8x32xf32>
    %140 = vector.shape_cast %139 : vector<1x8x32xf32> to vector<8x32xf32>
    %141 = vector.shape_cast %138 : vector<8x32xf32> to vector<1x8x32xf32>
    tpu.vector_store %arg14[%c0_53, %c0_54, %c0_55], %141 {strides = array<i32>} : memref<1x8x32xf32, #tpu.memory_space<vmem>>, vector<1x8x32xf32>,
    return
  }
  func.func @transform_0(%arg0: i32) -> (i32, i32, i32) {
    %c0_i32 = arith.constant 0 : i32
    %c0_i32_0 = arith.constant 0 : i32
    %c0_i32_1 = arith.constant 0 : i32
    return %arg0, %c0_i32, %c0_i32_0 : i32, i32, i32
  }
  func.func @transform_1(%arg0: i32) -> (i32, i32) {
    %c0_i32 = arith.constant 0 : i32
    %c0_i32_0 = arith.constant 0 : i32
    %c0_i32_1 = arith.constant 0 : i32
    return %c0_i32, %c0_i32_0 : i32, i32
  }
  func.func @transform_2(%arg0: i32) -> (i32, i32) {
    %c0_i32 = arith.constant 0 : i32
    %c0_i32_0 = arith.constant 0 : i32
    %c0_i32_1 = arith.constant 0 : i32
    return %c0_i32, %c0_i32_0 : i32, i32
  }
  func.func @transform_3(%arg0: i32) -> (i32, i32) {
    %c0_i32 = arith.constant 0 : i32
    %c0_i32_0 = arith.constant 0 : i32
    %c0_i32_1 = arith.constant 0 : i32
    return %c0_i32, %c0_i32_0 : i32, i32
  }
  func.func @transform_4(%arg0: i32) -> (i32, i32) {
    %c0_i32 = arith.constant 0 : i32
    %c0_i32_0 = arith.constant 0 : i32
    %c0_i32_1 = arith.constant 0 : i32
    return %c0_i32, %c0_i32_0 : i32, i32
  }
  func.func @transform_5(%arg0: i32) -> (i32, i32) {
    %c0_i32 = arith.constant 0 : i32
    %c0_i32_0 = arith.constant 0 : i32
    %c0_i32_1 = arith.constant 0 : i32
    return %c0_i32, %c0_i32_0 : i32, i32
  }
  func.func @transform_6(%arg0: i32) -> (i32, i32) {
    %c0_i32 = arith.constant 0 : i32
    %c0_i32_0 = arith.constant 0 : i32
    %c0_i32_1 = arith.constant 0 : i32
    return %c0_i32, %c0_i32_0 : i32, i32
  }
  func.func @transform_7(%arg0: i32) -> (i32, i32) {
    %c0_i32 = arith.constant 0 : i32
    %c0_i32_0 = arith.constant 0 : i32
    %c0_i32_1 = arith.constant 0 : i32
    return %c0_i32, %c0_i32_0 : i32, i32
  }
  func.func @transform_8(%arg0: i32) -> (i32, i32) {
    %c0_i32 = arith.constant 0 : i32
    %c0_i32_0 = arith.constant 0 : i32
    %c0_i32_1 = arith.constant 0 : i32
    return %c0_i32, %c0_i32_0 : i32, i32
  }
  func.func @transform_9(%arg0: i32) -> (i32, i32) {
    %c0_i32 = arith.constant 0 : i32
    %c0_i32_0 = arith.constant 0 : i32
    %c0_i32_1 = arith.constant 0 : i32
    return %c0_i32, %c0_i32_0 : i32, i32
  }
  func.func @transform_10(%arg0: i32) -> (i32, i32) {
    %c0_i32 = arith.constant 0 : i32
    %c0_i32_0 = arith.constant 0 : i32
    %c0_i32_1 = arith.constant 0 : i32
    return %c0_i32, %c0_i32_0 : i32, i32
  }
  func.func @transform_11(%arg0: i32) -> (i32, i32) {
    %c0_i32 = arith.constant 0 : i32
    %c0_i32_0 = arith.constant 0 : i32
    %c0_i32_1 = arith.constant 0 : i32
    return %c0_i32, %c0_i32_0 : i32, i32
  }
  func.func @transform_12(%arg0: i32) -> (i32, i32) {
    %c0_i32 = arith.constant 0 : i32
    %c0_i32_0 = arith.constant 0 : i32
    %c0_i32_1 = arith.constant 0 : i32
    return %c0_i32, %c0_i32_0 : i32, i32
  }
  func.func @transform_13(%arg0: i32) -> (i32, i32, i32) {
    %c0_i32 = arith.constant 0 : i32
    %c0_i32_0 = arith.constant 0 : i32
    %c0_i32_1 = arith.constant 0 : i32
    return %arg0, %c0_i32, %c0_i32_0 : i32, i32, i32
  }
}

</mosaic_0001>

<bundles_post_ra>
// kernel: gpt2_block.1
= control target key start
LH: loop header
LB: loop body
LE: loop exit
PB: predicated region body
PF: predicated region fallthrough
CT: control target
= control target key end

     0   :  { %s2276_s0 = inlined_call_operand.vmem [shape: f32[2,8,32], index: 0, kind: input, shape index: {}]   ;;  %s2277_s1 = inlined_call_operand.vmem [shape: f32[1,32], index: 1, kind: input, shape index: {}]   ;;  %s2278_s2 = inlined_call_operand.vmem [shape: f32[1,32], index: 2, kind: input, shape index: {}]   ;;  %s2279_s3 = inlined_call_operand.vmem [shape: bf16[32,96], index: 3, kind: input, shape index: {}]   ;;  %s2280_s4 = inlined_call_operand.vmem [shape: f32[1,96], index: 4, kind: input, shape index: {}]   ;;  %s2281_s5 = inlined_call_operand.vmem [shape: bf16[32,32], index: 5, kind: input, shape index: {}]   ;;  %s2282_s6 = inlined_call_operand.vmem [shape: f32[1,32], index: 6, kind: input, shape index: {}]   ;;  %s2283_s7 = inlined_call_operand.vmem [shape: f32[1,32], index: 7, kind: input, shape index: {}]   ;;  %s2284_s8 = inlined_call_operand.vmem [shape: f32[1,32], index: 8, kind: input, shape index: {}]   ;;  %s2285_s9 = inlined_call_operand.vmem [shape: bf16[32,128], index: 9, kind: input, shape index: {}]   ;;  %s2286_s10 = inlined_call_operand.vmem [shape: f32[1,128], index: 10, kind: input, shape index: {}]   ;;  %s2287_s11 = inlined_call_operand.vmem [shape: bf16[128,32], index: 11, kind: input, shape index: {}]   ;;  %s2288_s12 = inlined_call_operand.vmem [shape: f32[1,32], index: 12, kind: input, shape index: {}]   ;;  %s2289_s13 = inlined_call_operand.hbm [shape: f32[2,8,32], index: 13, kind: output, shape index: {}]  }
   0x1   :  { %2290 = sst [smem:[#allocation5_spill]] %s2276_s0 }
   0x2   :  { %2291 = sst [smem:[#allocation6_spill]] %s2277_s1 }
   0x3   :  { %2292 = sst [smem:[#allocation7_spill]] %s2278_s2 }
   0x4   :  { %2293 = sst [smem:[#allocation8_spill]] %s2279_s3 }
   0x5   :  { %18 = vsyncpa [#allocation3], 0 }
   0x6   :  { %20 = vsyncpa [#allocation3 + $0x1], 0  ;;  %s1886_s25 = smov 0   ;;  %s1888_s26 = smov 0  }
   0x7   :  { %s1890_s27 = smov 0   ;;  %s1892_s28 = smov 0  }
   0x8 LB: > { %s1907_s29 = sadd.s32 4294967295, %s1803_s28   ;;  %s1540_s30 = sadd.s32 4294967294, %s1803_s28   ;;  %s1803_s28 = sphi %s1892_s28, %s2303_s28   ;;  %s1799_s27 = sphi %s1890_s27, %s2302_s27   ;;  %s1795_s26 = sphi %s1888_s26, %s2301_s26   ;;  %s1791_s25 = sphi %s1886_s25, %s2300_s25  }
   0x9   : > { %s1911_s14 = sadd.s32 1, %s1803_s28   ;;  %s311_s15 = sadd.s32 1, %s1799_s27 }
   0xa   : > { %s308_s16 = ssub.s32 %s1803_s28, %s1911_s14  ;;  %p321_p0 = scmp.ne.s32.totalorder %s1799_s27, %s1795_s26 }
   0xb   : > { %p309_p1 = scmp.eq.s32.totalorder %s308_s16, 0  ;;  %p322_p2 = scmp.eq.s32.totalorder %s1907_s29, 1 }
   0xc   : > { %p327_p3 = scmp.ne.s32.totalorder %s1795_s26, %s1791_s25  ;;  %p328_p4 = scmp.eq.s32.totalorder %s1540_s30, 1 }
   0xd   : > { %s1922_s17 = scalar_select %p309_p1, %s1799_s27, %s311_s15  }
   0xe   : > { %p1924_p5 = por %p322_p2, %p321_p0  ;;  %p1928_p6 = por %p328_p4, %p327_p3 }
   0xf   : > { %p1543_p7 = scmp.ge.s32.totalorder %s1803_s28, 1  ;;  %p389_p8 = scmp.lt.s32.totalorder %s1803_s28, 3 }
  0x11   : > { %p390_p9 = pnand %p1543_p7, %p389_p8 }
  0x12   : > { %p432_p10 = scmp.lt.s32.totalorder (!%p390_p9), %s1907_s29, 1  ;;  %s2296_s0 = sld [smem:[#allocation5_spill]] (!%p390_p9) }
  0x13   : > { %393 = sbr.rel (%p390_p9) target bundleno = 1949 (0x79d), region = 72  ;;  %s2297_s3 = sld [smem:[#allocation8_spill]] (!%p390_p9) }
  0x14   : > { %s2298_s1 = sld [smem:[#allocation6_spill]] (!%p390_p9)  ;;  %s1806_s16 = smov (!%p390_p9), 104  }
  0x15   : > { %s2299_s2 = sld [smem:[#allocation7_spill]] (!%p390_p9)  ;;  %s1809_s22 = smov (!%p390_p9), 96  }
  0x16   : > { %s1810_s23 = smov (!%p390_p9), 64   ;;  %s1814_s30 = smov (!%p390_p9), 16  }
  0x17   : > { %s1815_s15 = smov (!%p390_p9), 8  }
  0x18   : > { %s433_s20 = scalar_select %p432_p10, %s1907_s29, 1  ;;  %vm440_vm0 = vcmask 261120   ;;  %v1805_v2 = vmov 32.0   ;;  %v1703_v32 = vld [vmem:[%s2280_s4] ss:$0 sm:$0xff]  ;;  %vm527_vm5 = vcmask 1047556  }
  0x19   : > { %1709 = vrcp.f32 %v1805_v2  ;;  %v1618_v14 = vld [vmem:[%s2297_s3 + $0x8] sm:$0xff]  ;;  %v1617_v15 = vld [vmem:[%s2297_s3] sm:$0xff]  ;;  %v1811_v43 = vmov 1983009808   ;;  %v1812_v52 = vmov 1934713408  }
  0x1a   : > { %s1545_s21 = sshll.u32 %s433_s20, 3  ;;  %508 = vmatpush.bf16.msra.mxu0 %v1618_v14  ;;  %v1701_v25 = vld [vmem:[%s2298_s1] ss:$0 sm:$0xff]  ;;  %s1807_s20 = smov 120   ;;  %v532_v44 = vunpack.c.l.s4 %v1811_v43  ;;  %v556_v53 = vunpack.c.l.s4 %v1812_v52  ;;  %vm905_vm6 = vcmask 64512   ;;  %vm1051_vm7 = vcmask 1043456  }
  0x1b   : > { %s435_s24 = scalar_lea.vmem %s2296_s0, %s1545_s21  ;;  %v1702_v28 = vld [vmem:[%s2299_s2] ss:$0 sm:$0xff]  ;;  %s1808_s21 = smov 112   ;;  %vm1260_vm9 = vcmask 130048   ;;  %vm1262_vm10 = vcmask 195584  }
  0x1c   : > { %v1939_v0 = vld [vmem:[%s435_s24] sm:$0xff]  ;;  %v1967_v49 = vunpack.c.0.s8 %v532_v44  ;;  %v1973_v58 = vunpack.c.0.s8 %v556_v53  ;;  %s1813_s24 = smov 24   ;;  %s429_s0 = sand.u32 1, %s1795_s26  }
  0x1d   : > { %v441_v1 = vsel %vm440_vm0, %v1939_v0, 0.0  ;;  %s1544_s1 = sshll.u32 %s429_s0, 3 }
  0x1e   : > { %442 = vadd.xlane.f32.xlu0 %v441_v1  ;;  %509 = vmatpush.bf16.msra.mxu0 %v1617_v15 }
  0x1f   : > { %v1710_v3 = vpop.eup %1709 }
  0x20   : > { %v445_v4 = vmul.f32 32.0, %v1710_v3  ;;  %vm449_vm1 = vweird.f32 %v1710_v3 }
  0x22   : > { %v446_v5 = vsub.f32 1.0, %v445_v4 }
  0x24   : > { %v447_v6 = vmul.f32 %v1710_v3, %v446_v5 }
  0x26   : > { %v448_v7 = vadd.f32 %v1710_v3, %v447_v6 }
  0x28   : > { %v1943_v8 = vsel %vm449_vm1, %v1710_v3, %v448_v7 }
  0x91   : > { %v443_v9 = vpop.xlane.xlu0 %442 }
  0x92   : > { %v451_v10 = vmul.f32 %v1943_v8, %v443_v9 }
  0x94   : > { %v452_v11 = vsub.f32 %v1939_v0, %v451_v10 }
  0x96   : > { %v453_v12 = vmul.f32 %v452_v11, %v452_v11 }
  0x98   : > { %v454_v13 = vsel %vm440_vm0, %v453_v12, 0.0 }
  0x99   : > { %455 = vadd.xlane.f32.xlu0 %v454_v13 }
 0x10c   : > { %v456_v16 = vpop.xlane.xlu0 %455 }
 0x10d   : > { %v457_v17 = vmul.f32 %v456_v16, %v1943_v8 }
 0x10f   : > { %v458_v18 = vadd.f32 1e-05, %v457_v17 }
 0x111   : > { %1711 = vrsqrt.f32 %v458_v18  ;;  %vm465_vm3 = vweird.f32 %v458_v18 }
 0x117   : > { %v1712_v19 = vpop.eup %1711 }
 0x118   : > { %v460_v20 = vmul.f32 %v1712_v19, %v458_v18  ;;  %vm466_vm2 = vweird.f32 %v1712_v19 }
 0x119   : > { %vm467_vm4 = vmor %vm465_vm3, %vm466_vm2 }
 0x11a   : > { %v461_v21 = vmul.f32 %v1712_v19, %v460_v20 }
 0x11c   : > { %v462_v22 = vmul.f32 0.5, %v461_v21 }
 0x11e   : > { %v463_v23 = vsub.f32 1.5, %v462_v22 }
 0x120   : > { %v464_v24 = vmul.f32 %v1712_v19, %v463_v23 }
 0x122   : > { %v468_v26 = vsel %vm467_vm4, %v1712_v19, %v464_v24 }
 0x123   : > { %v469_v27 = vmul.f32 %v468_v26, %v452_v11 }
 0x125   : > { %v473_v29 = vmul.f32 %v1701_v25, %v469_v27 }
 0x127   : > { %v477_v30 = vadd.f32 %v1702_v28, %v473_v29 }
 0x129   : > { %v478_v31 = vpack.c.bf16 %v477_v30, %v477_v30 }
 0x12b   : > { %1554 = vmatmul.msk.bf16.vlgmr.msra.gmra.mxu0 %vm440_vm0, %v478_v31 }
 0x1a8   : > { %v511_v33 = vpop.f32.mrf.mxu0 }
 0x1a9   : > { %v512_v34 = vadd.f32 %v1703_v32, %v511_v33 }
 0x1ab   : > { %646 = vrot.lane.b32.xlu2 %v512_v34, %s1806_s16  ;;  %642 = vrot.lane.b32.xlu1 %v512_v34, %s1807_s20  ;;  %v515_v36 = vmul.f32 0.35355338, %v512_v34 }
 0x1ad   : > { %v529_v55 = vrot.slane %v515_v36, 4 }
 0x1b0   : > { %v513_v35 = vpop.f32.mrf.mxu0 }
 0x1b3   : > { %644 = vrot.lane.b32.xlu1 %v512_v34, %s1808_s21 }
 0x1bb   : > { %517 = vrot.lane.b32.xlu1 %v515_v36, %s1807_s20 }
 0x1c3   : > { %523 = vrot.lane.b32.xlu1 %v515_v36, %s1806_s16 }
 0x205   : > { %v647_v39 = vpop.permute.xlu2 %646 }
 0x21d   : > { %v643_v37 = vpop.permute.xlu1 %642 }
 0x21e   : > { %v1681_v38 = vpack.i.bf16 %v643_v37, %v512_v34 }
 0x220   : > { %1682 = vrot.lane.b32.xlu2 %v1681_v38, %s1809_s22 }
 0x225   : > { %v645_v40 = vpop.permute.xlu1 %644 }
 0x226   : > { %v1696_v41 = vpack.i.bf16 %v647_v39, %v645_v40 }
 0x228   : > { %1687 = vrot.lane.b32.xlu0 %v1696_v41, %s1809_s22  ;;  %520 = vrot.lane.b32.xlu2 %v515_v36, %s1808_s21 }
 0x229   : > { %1697 = vrot.lane.b32.xlu1 %v1696_v41, %s1810_s23 }
 0x22d   : > { %v518_v42 = vpop.permute.xlu1 %517 }
 0x22e   : > { %v541_v47 = vrot.slane %v518_v42, 4 }
 0x230   : > { %1692 = vrot.lane.b32.xlu2 %v1681_v38, %s1810_s23  ;;  %s431_s23 = scalar_lea.vmem [#allocation2], %s1544_s1  ;;  %s1761_s1 = scalar_lea.hbm %s2289_s13, 16 }
 0x235   : > { %v524_v45 = vpop.permute.xlu1 %523 }
 0x236   : > { %v539_v48 = vrot.slane %v524_v45, 4  ;;  %v542_v50 = vsel %vm527_vm5, %v524_v45, %v541_v47 }
 0x237   : > { %v550_v54 = vperm.slane %v542_v50, %v1967_v49 }
 0x238   : > { %v540_v51 = vsel %vm527_vm5, %v539_v48, %v518_v42 }
 0x239   : > { %v546_v56 = vperm.slane %v540_v51, %v1967_v49  ;;  %v563_v61 = vrot.slane %v550_v54, 4 }
 0x23b   : > { %v551_v1 = vrot.slane %v546_v56, 4 }
 0x27a   : > { %v1965_v46 = vpop.permute.xlu2 %1682 }
 0x27b   : > { %v1685_v39 = vunpack.i.h.bf16 %v1965_v46  ;;  %v1684_v40 = vunpack.i.l.bf16 %v1965_v46 }
 0x27d   : > { %v674_v48 = vrot.slane %v1685_v39, 4  ;;  %v662_v50 = vrot.slane %v1684_v40, 4 }
 0x282   : > { %v521_v57 = vpop.permute.xlu2 %520 }
 0x283   : > { %v526_v59 = vrot.slane %v521_v57, 4  ;;  %v530_v60 = vsel %vm527_vm5, %v521_v57, %v529_v55 }
 0x284   : > { %v538_v62 = vperm.slane %v530_v60, %v1967_v49 }
 0x285   : > { %v528_v63 = vsel %vm527_vm5, %v526_v59, %v515_v36 }
 0x286   : > { %v534_v2 = vperm.slane %v528_v63, %v1967_v49  ;;  %v564_v3 = vsel %vm527_vm5, %v563_v61, %v538_v62  ;;  %v565_v4 = vrot.slane %v538_v62, 4 }
 0x287   : > { %v570_v5 = vperm.slane %v564_v3, %v1973_v58 }
 0x288   : > { %v552_v6 = vsel %vm527_vm5, %v551_v1, %v534_v2  ;;  %v553_v7 = vrot.slane %v534_v2, 4  ;;  %v566_v9 = vsel %vm527_vm5, %v550_v54, %v565_v4 }
 0x289   : > { %v558_v10 = vperm.slane %v552_v6, %v1973_v58  ;;  %v574_v11 = vperm.slane %v566_v9, %v1973_v58  ;;  %v579_v14 = vrot.slane %v570_v5, 4 }
 0x28a   : > { %v554_v12 = vsel %vm527_vm5, %v546_v56, %v553_v7  ;;  %v1693_v33 = vpop.permute.xlu2 %1692 }
 0x28b   : > { %v562_v13 = vperm.slane %v554_v12, %v1973_v58  ;;  %v581_v15 = vrot.slane %v574_v11, 4  ;;  %v575_v16 = vrot.slane %v558_v10, 4  ;;  %v580_v23 = vsel %vm527_vm5, 0.0, %v579_v14 }
 0x28c   : > { %v1695_v41 = vunpack.i.h.bf16 %v1693_v33  ;;  %v1694_v42 = vunpack.i.l.bf16 %v1693_v33 }
 0x28d   : > { %v577_v17 = vrot.slane %v562_v13, 4  ;;  %v582_v18 = vsel %vm527_vm5, 0.0, %v581_v15  ;;  %v594_v19 = vsel %vm527_vm5, %v581_v15, %v570_v5  ;;  %v576_v29 = vsel %vm527_vm5, 0.0, %v575_v16 }
 0x28e   : > { %v598_v20 = vperm.slane %v594_v19, %v1967_v49  ;;  %v599_v21 = vrot.slane %v582_v18, 4  ;;  %v800_v51 = vrot.slane %v1695_v41, 4  ;;  %v788_v52 = vrot.slane %v1694_v42, 4 }
 0x28f   : > { %v578_v22 = vsel %vm527_vm5, 0.0, %v577_v17  ;;  %v583_v24 = vsel %vm527_vm5, %v577_v17, %v558_v10 }
 0x290   : > { %v588_v25 = vrot.slane %v578_v22, 4  ;;  %v600_v26 = vsel %vm527_vm5, %v599_v21, %v580_v23  ;;  %v619_v27 = vrot.slane %v598_v20, 4  ;;  %v587_v28 = vperm.slane %v583_v24, %v1967_v49 }
 0x291   : > { %v604_v30 = vperm.slane %v600_v26, %v1967_v49 }
 0x292   : > { %v589_v31 = vsel %vm527_vm5, %v588_v25, %v576_v29  ;;  %v607_v32 = vrot.slane %v587_v28, 4 }
 0x293   : > { %v593_v34 = vperm.slane %v589_v31, %v1967_v49  ;;  %v620_v35 = vsel %vm527_vm5, %v604_v30, %v619_v27  ;;  %v617_v37 = vrot.slane %v604_v30, 4 }
 0x294   : > { %v2001_v36 = vperm.slane %v620_v35, %v1973_v58 }
 0x295   : > { %v608_v38 = vsel %vm527_vm5, %v593_v34, %v607_v32  ;;  %v605_v43 = vrot.slane %v593_v34, 4  ;;  %v618_v47 = vsel %vm527_vm5, %v617_v37, %v598_v20 }
 0x296   : > { %v2007_v44 = vperm.slane %v608_v38, %v1973_v58  ;;  %v633_v45 = vrot.slane %v2001_v36, 4  ;;  %v2013_v57 = vperm.slane %v618_v47, %v1973_v58 }
 0x297   : > { %v606_v46 = vsel %vm527_vm5, %v605_v43, %v587_v28 }
 0x298   : > { %v2017_v61 = vsel %vm527_vm5, %v633_v45, %v2007_v44  ;;  %v635_v62 = vrot.slane %v2007_v44, 4  ;;  %v2043_v32 = vperm.slane %v606_v46, %v1973_v58 }
 0x29a   : > { %v1688_v53 = vpop.permute.xlu0 %1687  ;;  %v631_v44 = vrot.slane %v2043_v32, 4 }
 0x29b   : > { %v1690_v54 = vunpack.i.h.bf16 %v1688_v53  ;;  %v1689_v55 = vunpack.i.l.bf16 %v1688_v53  ;;  %v1698_v56 = vpop.permute.xlu1 %1697 }
 0x29c   : > { %v1700_v59 = vunpack.i.h.bf16 %v1698_v56  ;;  %v1699_v60 = vunpack.i.l.bf16 %v1698_v56 }
 0x29d   : > { %v672_v63 = vrot.slane %v1690_v54, 4  ;;  %v675_v1 = vsel %vm527_vm5, %v1690_v54, %v674_v48  ;;  %v660_v2 = vrot.slane %v1689_v55, 4  ;;  %v663_v3 = vsel %vm527_vm5, %v1689_v55, %v662_v50 }
 0x29e   : > { %v683_v4 = vperm.slane %v675_v1, %v1967_v49  ;;  %v671_v5 = vperm.slane %v663_v3, %v1967_v49  ;;  %v798_v6 = vrot.slane %v1700_v59, 4  ;;  %v801_v7 = vsel %vm527_vm5, %v1700_v59, %v800_v51 }
 0x29f   : > { %v673_v9 = vsel %vm527_vm5, %v672_v63, %v1685_v39  ;;  %v661_v10 = vsel %vm527_vm5, %v660_v2, %v1684_v40  ;;  %v809_v11 = vperm.slane %v801_v7, %v1967_v49  ;;  %v786_v12 = vrot.slane %v1699_v60, 4 }
 0x2a0   : > { %v679_v13 = vperm.slane %v673_v9, %v1967_v49  ;;  %v696_v14 = vrot.slane %v683_v4, 4  ;;  %v667_v15 = vperm.slane %v661_v10, %v1967_v49  ;;  %v698_v16 = vrot.slane %v671_v5, 4 }
 0x2a1   : > { %v799_v17 = vsel %vm527_vm5, %v798_v6, %v1695_v41  ;;  %v822_v18 = vrot.slane %v809_v11, 4  ;;  %v787_v19 = vsel %vm527_vm5, %v786_v12, %v1694_v42  ;;  %v789_v20 = vsel %vm527_vm5, %v1699_v60, %v788_v52 }
 0x2a2   : > { %v684_v21 = vrot.slane %v679_v13, 4  ;;  %v686_v22 = vrot.slane %v667_v15, 4  ;;  %v697_v23 = vsel %vm527_vm5, %v696_v14, %v671_v5  ;;  %v699_v24 = vsel %vm527_vm5, %v683_v4, %v698_v16 }
 0x2a3   : > { %v703_v25 = vperm.slane %v697_v23, %v1973_v58  ;;  %v707_v26 = vperm.slane %v699_v24, %v1973_v58  ;;  %v805_v27 = vperm.slane %v799_v17, %v1967_v49  ;;  %v793_v28 = vperm.slane %v787_v19, %v1967_v49 }
 0x2a4   : > { %v685_v29 = vsel %vm527_vm5, %v684_v21, %v667_v15  ;;  %v687_v30 = vsel %vm527_vm5, %v679_v13, %v686_v22  ;;  %v797_v31 = vperm.slane %v789_v20, %v1967_v49 }
 0x2a5   : > { %v691_v33 = vperm.slane %v685_v29, %v1973_v58  ;;  %v695_v34 = vperm.slane %v687_v30, %v1973_v58  ;;  %v712_v35 = vrot.slane %v703_v25, 4  ;;  %v714_v37 = vrot.slane %v707_v26, 4 }
 0x2a6   : > { %v810_v38 = vrot.slane %v805_v27, 4  ;;  %v812_v39 = vrot.slane %v793_v28, 4  ;;  %v823_v40 = vsel %vm527_vm5, %v822_v18, %v797_v31  ;;  %v824_v41 = vrot.slane %v797_v31, 4 }
 0x2a7   : > { %v708_v42 = vrot.slane %v691_v33, 4  ;;  %v710_v43 = vrot.slane %v695_v34, 4  ;;  %v713_v45 = vsel %vm527_vm5, 0.0, %v712_v35  ;;  %v715_v47 = vsel %vm527_vm5, 0.0, %v714_v37 }
 0x2a8   : > { %v732_v48 = vrot.slane %v715_v47, 4  ;;  %v811_v50 = vsel %vm527_vm5, %v810_v38, %v793_v28  ;;  %v813_v51 = vsel %vm527_vm5, %v805_v27, %v812_v39  ;;  %v825_v52 = vsel %vm527_vm5, %v809_v11, %v824_v41 }
 0x2a9   : > { %v711_v53 = vsel %vm527_vm5, 0.0, %v710_v43  ;;  %v817_v54 = vperm.slane %v811_v50, %v1973_v58  ;;  %v821_v55 = vperm.slane %v813_v51, %v1973_v58  ;;  %v829_v56 = vperm.slane %v823_v40, %v1973_v58 }
 0x2aa   : > { %v833_v46 = vperm.slane %v825_v52, %v1973_v58  ;;  %v709_v59 = vsel %vm527_vm5, 0.0, %v708_v42  ;;  %v716_v60 = vsel %vm527_vm5, %v710_v43, %v691_v33  ;;  %v721_v63 = vrot.slane %v711_v53, 4 }
 0x2ab   : > { %v834_v1 = vrot.slane %v817_v54, 4  ;;  %v836_v2 = vrot.slane %v821_v55, 4  ;;  %v838_v3 = vrot.slane %v829_v56, 4  ;;  %v720_v4 = vperm.slane %v716_v60, %v1967_v49 }
 0x2ac   : > { %v840_v5 = vrot.slane %v833_v46, 4  ;;  %v722_v6 = vsel %vm527_vm5, %v721_v63, %v709_v59  ;;  %v727_v7 = vsel %vm527_vm5, %v714_v37, %v703_v25  ;;  %v733_v9 = vsel %vm527_vm5, %v732_v48, %v713_v45 }
 0x2ad   : > { %v837_v10 = vsel %vm527_vm5, 0.0, %v836_v2  ;;  %v839_v11 = vsel %vm527_vm5, 0.0, %v838_v3  ;;  %v726_v12 = vperm.slane %v722_v6, %v1967_v49  ;;  %v731_v13 = vperm.slane %v727_v7, %v1967_v49 }
 0x2ae   : > { %v841_v14 = vsel %vm527_vm5, 0.0, %v840_v5  ;;  %v847_v15 = vrot.slane %v837_v10, 4  ;;  %v853_v16 = vsel %vm527_vm5, %v840_v5, %v829_v56  ;;  %v737_v17 = vperm.slane %v733_v9, %v1967_v49 }
 0x2af   : > { %v858_v18 = vrot.slane %v841_v14, 4  ;;  %v740_v19 = vrot.slane %v720_v4, 4  ;;  %v752_v20 = vrot.slane %v731_v13, 4  ;;  %v835_v21 = vsel %vm527_vm5, 0.0, %v834_v1 }
 0x2b0   : > { %v842_v22 = vsel %vm527_vm5, %v836_v2, %v817_v54  ;;  %v848_v23 = vsel %vm527_vm5, %v847_v15, %v835_v21  ;;  %v857_v24 = vperm.slane %v853_v16, %v1967_v49  ;;  %v738_v25 = vrot.slane %v726_v12, 4 }
 0x2b1   : > { %v741_v26 = vsel %vm527_vm5, %v726_v12, %v740_v19  ;;  %v753_v27 = vsel %vm527_vm5, %v737_v17, %v752_v20  ;;  %v846_v28 = vperm.slane %v842_v22, %v1967_v49  ;;  %v852_v29 = vperm.slane %v848_v23, %v1967_v49 }
 0x2b2   : > { %v749_v30 = vperm.slane %v741_v26, %v1973_v58  ;;  %v761_v31 = vperm.slane %v753_v27, %v1973_v58  ;;  %v859_v33 = vsel %vm527_vm5, %v858_v18, %v839_v11  ;;  %v878_v34 = vrot.slane %v857_v24, 4 }
 0x2b3   : > { %v863_v35 = vperm.slane %v859_v33, %v1967_v49  ;;  %v866_v37 = vrot.slane %v846_v28, 4  ;;  %v739_v38 = vsel %vm527_vm5, %v738_v25, %v720_v4  ;;  %v750_v39 = vrot.slane %v737_v17, 4 }
 0x2b4   : > { %v766_v40 = vrot.slane %v761_v31, 4  ;;  %v745_v41 = vperm.slane %v739_v38, %v1973_v58  ;;  %v768_v42 = vrot.slane %v749_v30, 4  ;;  %v864_v43 = vrot.slane %v852_v29, 4 }
 0x2b5   : > { %v867_v45 = vsel %vm527_vm5, %v852_v29, %v866_v37  ;;  %v879_v47 = vsel %vm527_vm5, %v863_v35, %v878_v34  ;;  %v751_v48 = vsel %vm527_vm5, %v750_v39, %v731_v13  ;;  %v876_v50 = vrot.slane %v863_v35, 4 }
 0x2b6   : > { %v767_v51 = vsel %vm527_vm5, %v766_v40, %v749_v30  ;;  %v875_v52 = vperm.slane %v867_v45, %v1973_v58  ;;  %v887_v53 = vperm.slane %v879_v47, %v1973_v58  ;;  %v757_v54 = vperm.slane %v751_v48, %v1973_v58 }
 0x2b7   : > { %v772_v55 = vpack.c.bf16 %v767_v51, %v767_v51  ;;  %v769_v56 = vsel %vm527_vm5, %v761_v31, %v768_v42  ;;  %v865_v46 = vsel %vm527_vm5, %v864_v43, %v846_v28  ;;  %v877_v59 = vsel %vm527_vm5, %v876_v50, %v857_v24 }
 0x2b8   : > { %v892_v60 = vrot.slane %v887_v53, 4  ;;  %v894_v63 = vrot.slane %v875_v52, 4  ;;  %v762_v1 = vrot.slane %v757_v54, 4  ;;  %v773_v2 = vpack.c.bf16 %v769_v56, %v769_v56 }
 0x2b9   : > { %v948_v3 = vsel %vm905_vm6, %v772_v55, 0  ;;  %v871_v4 = vperm.slane %v865_v46, %v1973_v58  ;;  %v883_v5 = vperm.slane %v877_v59, %v1973_v58  ;;  %v764_v6 = vrot.slane %v745_v41, 4 }
 0x2ba   : > { %957 = vmatpush.bf16.xpose.msra.mxu3 %v948_v3  ;;  %v893_v7 = vsel %vm527_vm5, %v892_v60, %v875_v52  ;;  %v763_v9 = vsel %vm527_vm5, %v762_v1, %v745_v41  ;;  %v967_v10 = vsel %vm905_vm6, %v773_v2, 0  ;;  %v895_v11 = vsel %vm527_vm5, %v887_v53, %v894_v63 }
 0x2bb   : > { %v898_v12 = vpack.c.bf16 %v893_v7, %v893_v7  ;;  %v770_v13 = vpack.c.bf16 %v763_v9, %v763_v9  ;;  %976 = vmatpush.bf16.xpose.msrb.mxu0 %v967_v10  ;;  %v888_v14 = vrot.slane %v883_v5, 4  ;;  %v899_v15 = vpack.c.bf16 %v895_v11, %v895_v11 }
 0x2bc   : > { %v765_v16 = vsel %vm527_vm5, %v757_v54, %v764_v6  ;;  %v890_v17 = vrot.slane %v871_v4, 4  ;;  %v629_v18 = vrot.slane %v2013_v57, 4  ;;  %v636_v19 = vsel %vm527_vm5, %v2001_v36, %v635_v62 }
 0x2bd   : > { %v1091_v20 = vsel %vm1051_vm7, %v898_v12, 0  ;;  %v910_v21 = vsel %vm905_vm6, %v770_v13, 0  ;;  %v889_v22 = vsel %vm527_vm5, %v888_v14, %v871_v4  ;;  %v1110_v23 = vsel %vm1051_vm7, %v899_v15, 0 }
 0x2be   : > { %919 = vmatpush.bf16.xpose.msra.mxu1 %v910_v21  ;;  %v896_v24 = vpack.c.bf16 %v889_v22, %v889_v22  ;;  %v771_v25 = vpack.c.bf16 %v765_v16, %v765_v16  ;;  %v891_v26 = vsel %vm527_vm5, %v883_v5, %v890_v17  ;;  %v639_v28 = vpack.c.bf16 %v2017_v61, %v2017_v61 }
 0x2bf   : > { %v897_v27 = vpack.c.bf16 %v891_v26, %v891_v26  ;;  %v630_v29 = vsel %vm527_vm5, %v629_v18, %v2043_v32  ;;  %v640_v31 = vpack.c.bf16 %v636_v19, %v636_v19  ;;  %v632_v34 = vsel %vm527_vm5, %v2013_v57, %v631_v44 }
 0x2c0   : > { %v1053_v36 = vsel %vm1051_vm7, %v896_v24, 0  ;;  %v929_v62 = vsel %vm905_vm6, %v771_v25, 0  ;;  %v637_v33 = vpack.c.bf16 %v630_v29, %v630_v29  ;;  %v638_v61 = vpack.c.bf16 %v632_v34, %v632_v34 }
 0x2c1   : > { %938 = vmatpush.bf16.xpose.msra.mxu2 %v929_v62  ;;  %v1072_v30 = vsel %vm1051_vm7, %v897_v27, 0  ;;  %1557 = vmatmul.msk.bf16.vlgmr.msra.gmra.mxu3 %vm905_vm6, %v639_v28  ;;  %v900_v32 = vlaneseq }
 0x2c2   : > { %1100 = vmatpush.bf16.msrb.mxu3 %v1091_v20  ;;  %1558 = vmatmul.msk.bf16.vlgmr.msrb.gmra.mxu0 %vm905_vm6, %v640_v31 }
 0x2c3   : > { %1119 = vmatpush.bf16.msra.mxu0 %v1110_v23  ;;  %v901_v35 = vshrl.u32 %v900_v32, 7  ;;  %v903_v37 = vand.u32 127, %v900_v32 }
 0x2c5   : > { %1555 = vmatmul.msk.bf16.vlgmr.msra.gmra.mxu1 %vm905_vm6, %v637_v33  ;;  %vm904_vm8 = vcmp.ge.s32.totalorder %v901_v35, %v903_v37 }
 0x2c6   : > { %1062 = vmatpush.bf16.msrb.mxu1 %v1053_v36 }
 0x2c8   : > { %1556 = vmatmul.msk.bf16.vlgmr.msra.gmra.mxu2 %vm905_vm6, %v638_v61 }
 0x2c9   : > { %1081 = vmatpush.bf16.msrb.mxu2 %v1072_v30 }
 0x33f   : > { %v978_v38 = vpop.f32.mrf.mxu0 }
 0x340   : > { %v987_v50 = vsel %vm904_vm8, %v978_v38, -1e+30 }
 0x341   : > { %v997_v54 = vsel %vm905_vm6, %v987_v50, -inf }
 0x342   : > { %v921_v39 = vpop.f32.mrf.mxu1 }
 0x343   : > { %v984_v40 = vsel %vm904_vm8, %v921_v39, -1e+30 }
 0x344   : > { %v988_v41 = vsel %vm905_vm6, %v984_v40, -inf  ;;  %v959_v42 = vpop.f32.mrf.mxu3 }
 0x345   : > { %989 = vmax.xlane.f32.xlu1 %v988_v41  ;;  %v986_v43 = vsel %vm904_vm8, %v959_v42, -1e+30 }
 0x346   : > { %v994_v45 = vsel %vm905_vm6, %v986_v43, -inf }
 0x347   : > { %995 = vmax.xlane.f32.xlu2 %v994_v45  ;;  %v980_v57 = vpop.f32.mrf.mxu0 }
 0x34a   : > { %v923_v47 = vpop.f32.mrf.mxu1 }
 0x34b   : > { %v940_v48 = vpop.f32.mrf.mxu2 }
 0x34c   : > { %v985_v51 = vsel %vm904_vm8, %v940_v48, -1e+30  ;;  %v961_v53 = vpop.f32.mrf.mxu3 }
 0x34d   : > { %v991_v52 = vsel %vm905_vm6, %v985_v51, -inf }
 0x34e   : > { %992 = vmax.xlane.f32.xlu0 %v991_v52 }
 0x34f   : > { %998 = vmax.xlane.f32.xlu2 %v997_v54 }
 0x353   : > { %v942_v55 = vpop.f32.mrf.mxu2 }
 0x3b8   : > { %v990_v56 = vpop.xlane.xlu1 %989 }
 0x3b9   : > { %v1012_v46 = vsub.f32 %v984_v40, %v990_v56  ;;  %v1000_v21 = vsub.f32 -inf, %v990_v56 }
 0x3ba   : > { %v996_v60 = vpop.xlane.xlu2 %995 }
 0x3bb   : > { %v1016_v59 = vmul.f32 1.442695, %v1012_v46  ;;  %v1014_v63 = vsub.f32 %v986_v43, %v996_v60  ;;  %v1002_v22 = vsub.f32 -inf, %v996_v60  ;;  %v1004_v23 = vmul.f32 1.442695, %v1000_v21 }
 0x3bd   : > { %1713 = vpow2.f32 %v1016_v59  ;;  %v1020_v1 = vmul.f32 1.442695, %v1014_v63  ;;  %v1008_v25 = vmul.f32 1.442695, %v1002_v22 }
 0x3bf   : > { %1715 = vpow2.f32 %v1020_v1 }
 0x3c1   : > { %v993_v2 = vpop.xlane.xlu0 %992 }
 0x3c2   : > { %v1013_v3 = vsub.f32 %v985_v51, %v993_v2  ;;  %v999_v4 = vpop.xlane.xlu2 %998  ;;  %v1001_v26 = vsub.f32 -inf, %v993_v2 }
 0x3c3   : > { %v1714_v5 = vpop.eup %1713  ;;  %v1015_v7 = vsub.f32 %v987_v50, %v999_v4  ;;  %v1003_v24 = vsub.f32 -inf, %v999_v4 }
 0x3c4   : > { %v1018_v6 = vmul.f32 1.442695, %v1013_v3  ;;  %v1028_v9 = vsel %vm905_vm6, %v1714_v5, 0.0  ;;  %v1044_v10 = vpack.c.bf16 %v1714_v5, %v1714_v5  ;;  %v1006_v44 = vmul.f32 1.442695, %v1001_v26 }
 0x3c5   : > { %v1022_v11 = vmul.f32 1.442695, %v1015_v7  ;;  %1029 = vadd.xlane.f32.xlu2 %v1028_v9  ;;  %v1716_v12 = vpop.eup %1715  ;;  %v1010_v27 = vmul.f32 1.442695, %v1003_v24 }
 0x3c6   : > { %1717 = vpow2.f32 %v1018_v6  ;;  %1559 = vmatmul.msk.bf16.vlgmr.msrb.gmra.mxu1 %vm905_vm6, %v1044_v10  ;;  %v1034_v13 = vsel %vm905_vm6, %v1716_v12, 0.0  ;;  %v1046_v14 = vpack.c.bf16 %v1716_v12, %v1716_v12 }
 0x3c7   : > { %1719 = vpow2.f32 %v1022_v11  ;;  %1035 = vadd.xlane.f32.xlu0 %v1034_v13 }
 0x3c8   : > { %1561 = vmatmul.msk.bf16.vlgmr.msrb.gmra.mxu3 %vm905_vm6, %v1046_v14  ;;  %1721 = vpow2.f32 %v1004_v23 }
 0x3c9   : > { %1723 = vpow2.f32 %v1008_v25 }
 0x3ca   : > { %1725 = vpow2.f32 %v1010_v27 }
 0x3cb   : > { %1727 = vpow2.f32 %v1006_v44 }
 0x3cc   : > { %v1718_v15 = vpop.eup %1717 }
 0x3cd   : > { %v1045_v16 = vpack.c.bf16 %v1718_v15, %v1718_v15  ;;  %v1720_v17 = vpop.eup %1719  ;;  %v1031_v19 = vsel %vm905_vm6, %v1718_v15, 0.0 }
 0x3ce   : > { %v1047_v18 = vpack.c.bf16 %v1720_v17, %v1720_v17  ;;  %v1037_v20 = vsel %vm905_vm6, %v1720_v17, 0.0  ;;  %v1722_v36 = vpop.eup %1721 }
 0x3cf   : > { %1560 = vmatmul.msk.bf16.vlgmr.msrb.gmra.mxu2 %vm905_vm6, %v1045_v16  ;;  %1032 = vadd.xlane.f32.xlu0 %v1031_v19  ;;  %v1724_v28 = vpop.eup %1723  ;;  %v1024_v30 = vmul.f32 0.0, %v1722_v36 }
 0x3d0   : > { %1038 = vadd.xlane.f32.xlu1 %v1037_v20  ;;  %1562 = vmatmul.msk.bf16.vlgmr.msra.gmra.mxu0 %vm905_vm6, %v1047_v18  ;;  %v1726_v31 = vpop.eup %1725  ;;  %v1026_v34 = vmul.f32 0.0, %v1724_v28 }
 0x3d1   : > { %v1027_v35 = vmul.f32 0.0, %v1726_v31  ;;  %v1728_v38 = vpop.eup %1727 }
 0x3d2   : > { %v1025_v41 = vmul.f32 0.0, %v1728_v38 }
 0x438   : > { %v1030_v29 = vpop.xlane.xlu2 %1029 }
 0x439   : > { %v1040_v33 = vadd.f32 %v1030_v29, %v1024_v30 }
 0x43a   : > { %v1036_v62 = vpop.xlane.xlu0 %1035 }
 0x43b   : > { %v1042_v32 = vadd.f32 %v1036_v62, %v1026_v34  ;;  %1729 = vrcp.f32 %v1040_v33 }
 0x43d   : > { %1731 = vrcp.f32 %v1042_v32 }
 0x441   : > { %v1730_v57 = vpop.eup %1729 }
 0x442   : > { %v1033_v40 = vpop.xlane.xlu0 %1032 }
 0x443   : > { %v1064_v61 = vpop.f32.mrf.mxu1  ;;  %v1039_v37 = vpop.xlane.xlu1 %1038  ;;  %v1041_v43 = vadd.f32 %v1033_v40, %v1025_v41 }
 0x444   : > { %v1043_v39 = vadd.f32 %v1039_v37, %v1027_v35  ;;  %v1125_v42 = vadd.f32 %v1064_v61, %v1024_v30  ;;  %v1732_v51 = vpop.eup %1731 }
 0x446   : > { %1733 = vrcp.f32 %v1043_v39  ;;  %v1133_v48 = vmul.f32 %v1730_v57, %v1125_v42 }
 0x447   : > { %1735 = vrcp.f32 %v1041_v43 }
 0x448   : > { %v1139_v56 = vrot.slane %v1133_v48, 4 }
 0x44b   : > { %v1066_v45 = vpop.f32.mrf.mxu1  ;;  %v1102_v47 = vpop.f32.mrf.mxu3 }
 0x44c   : > { %v1127_v50 = vadd.f32 %v1102_v47, %v1026_v34  ;;  %v1734_v55 = vpop.eup %1733 }
 0x44d   : > { %v1121_v52 = vpop.f32.mrf.mxu0  ;;  %v1736_v4 = vpop.eup %1735 }
 0x44e   : > { %v1135_v53 = vmul.f32 %v1732_v51, %v1127_v50  ;;  %v1128_v54 = vadd.f32 %v1121_v52, %v1027_v35 }
 0x450   : > { %v1137_v46 = vrot.slane %v1135_v53, 4  ;;  %v1136_v59 = vmul.f32 %v1734_v55, %v1128_v54  ;;  %v1140_v1 = vsel %vm527_vm5, %v1135_v53, %v1139_v56 }
 0x451   : > { %v1148_v9 = vperm.slane %v1140_v1, %v1967_v49 }
 0x452   : > { %v1083_v60 = vpop.f32.mrf.mxu2  ;;  %v1138_v63 = vsel %vm527_vm5, %v1137_v46, %v1133_v48  ;;  %v1149_v2 = vrot.slane %v1136_v59, 4 }
 0x453   : > { %v1126_v3 = vadd.f32 %v1083_v60, %v1025_v41  ;;  %v1144_v5 = vperm.slane %v1138_v63, %v1967_v49  ;;  %v1104_v6 = vpop.f32.mrf.mxu3  ;;  %v1175_v16 = vrot.slane %v1148_v9, 4 }
 0x455   : > { %v1134_v7 = vmul.f32 %v1736_v4, %v1126_v3  ;;  %v1163_v10 = vrot.slane %v1144_v5, 4  ;;  %v1123_v11 = vpop.f32.mrf.mxu0 }
 0x457   : > { %v1150_v12 = vsel %vm527_vm5, %v1149_v2, %v1134_v7  ;;  %v1151_v13 = vrot.slane %v1134_v7, 4 }
 0x458   : > { %v1156_v14 = vperm.slane %v1150_v12, %v1967_v49 }
 0x459   : > { %v1152_v15 = vsel %vm527_vm5, %v1136_v59, %v1151_v13 }
 0x45a   : > { %v1160_v17 = vperm.slane %v1152_v15, %v1967_v49  ;;  %v1161_v18 = vrot.slane %v1156_v14, 4  ;;  %v1164_v19 = vsel %vm527_vm5, %v1156_v14, %v1163_v10  ;;  %v1085_v20 = vpop.f32.mrf.mxu2  ;;  %v1704_v14 = vld [vmem:[%s2282_s6] ss:$0 sm:$0xff] }
 0x45b   : > { %v1172_v21 = vperm.slane %v1164_v19, %v1973_v58 }
 0x45c   : > { %v1162_v22 = vsel %vm527_vm5, %v1161_v18, %v1144_v5  ;;  %v1173_v23 = vrot.slane %v1160_v17, 4  ;;  %v1176_v24 = vsel %vm527_vm5, %v1160_v17, %v1175_v16  ;;  %v1620_v5 = vld [vmem:[%s2281_s5 + $0x8] sm:$0xff] }
 0x45d   : > { %v1168_v25 = vperm.slane %v1162_v22, %v1973_v58  ;;  %v1184_v26 = vperm.slane %v1176_v24, %v1973_v58  ;;  %v1187_v27 = vrot.slane %v1172_v21, 4  ;;  %1294 = vmatpush.bf16.msra.mxu1 %v1620_v5 }
 0x45e   : > { %v1174_v44 = vsel %vm527_vm5, %v1173_v23, %v1148_v9 }
 0x45f   : > { %v1180_v36 = vperm.slane %v1174_v44, %v1973_v58  ;;  %v1185_v62 = vrot.slane %v1168_v25, 4  ;;  %v1188_v28 = vsel %vm527_vm5, 0.0, %v1187_v27  ;;  %v1191_v29 = vrot.slane %v1184_v26, 4  ;;  %v1630_v26 = vld [vmem:[%s2287_s11 + $0x38] sm:$0xff] }
 0x460   : > { %v1198_v30 = vrot.slane %v1188_v28, 4  ;;  %v1193_v31 = vsel %vm527_vm5, %v1187_v27, %v1168_v25  ;;  %v1622_v25 = vld [vmem:[%s2285_s9 + $0x8] sm:$0xff]  ;;  %1445 = vmatpush.bf16.msra.mxu3 %v1630_v26 }
 0x461   : > { %v1186_v33 = vsel %vm527_vm5, 0.0, %v1185_v62  ;;  %v1189_v34 = vrot.slane %v1180_v36, 4  ;;  %v1192_v61 = vsel %vm527_vm5, 0.0, %v1191_v29  ;;  %v1197_v32 = vperm.slane %v1193_v31, %v1967_v49  ;;  %1364 = vmatpush.bf16.msra.mxu2 %v1622_v25 }
 0x462   : > { %v1199_v35 = vsel %vm527_vm5, %v1198_v30, %v1186_v33  ;;  %v1204_v37 = vsel %vm527_vm5, %v1191_v29, %v1180_v36  ;;  %v1209_v38 = vrot.slane %v1192_v61, 4  ;;  %v1629_v36 = vld [vmem:[%s2287_s11 + $0x30] sm:$0xff] }
 0x463   : > { %v1190_v39 = vsel %vm527_vm5, 0.0, %v1189_v34  ;;  %v1203_v40 = vperm.slane %v1199_v35, %v1967_v49  ;;  %v1208_v41 = vperm.slane %v1204_v37, %v1967_v49  ;;  %v1217_v42 = vrot.slane %v1197_v32, 4  ;;  %v1706_v35 = vld [vmem:[%s2284_s8] ss:$0 sm:$0xff] }
 0x464   : > { %v1210_v43 = vsel %vm527_vm5, %v1209_v38, %v1190_v39  ;;  %1446 = vmatpush.bf16.msra.mxu3 %v1629_v36 }
 0x465   : > { %v1214_v45 = vperm.slane %v1210_v43, %v1967_v49  ;;  %v1218_v57 = vsel %vm527_vm5, %v1203_v40, %v1217_v42  ;;  %v1229_v47 = vrot.slane %v1208_v41, 4  ;;  %v1215_v48 = vrot.slane %v1203_v40, 4  ;;  %v1628_v40 = vld [vmem:[%s2287_s11 + $0x28] sm:$0xff]  ;;  %v1626_v42 = vld [vmem:[%s2287_s11 + $0x18] sm:$0xff]  ;;  %v1625_v43 = vld [vmem:[%s2287_s11 + $0x10] sm:$0xff] }
 0x466   : > { %v1226_v50 = vperm.slane %v1218_v57, %v1973_v58  ;;  %v1623_v57 = vld [vmem:[%s2287_s11] sm:$0xff] }
 0x467   : > { %v1230_v51 = vsel %vm527_vm5, %v1214_v45, %v1229_v47  ;;  %v1216_v52 = vsel %vm527_vm5, %v1215_v48, %v1197_v32  ;;  %v1227_v53 = vrot.slane %v1214_v45, 4  ;;  %v1624_v45 = vld [vmem:[%s2287_s11 + $0x8] sm:$0xff]  ;;  %v1707_v47 = vld [vmem:[%s2286_s10] ss:$0 sm:$0xff] }
 0x468   : > { %v1238_v54 = vperm.slane %v1230_v51, %v1973_v58  ;;  %v1245_v55 = vrot.slane %v1226_v50, 4  ;;  %v1222_v56 = vperm.slane %v1216_v52, %v1973_v58  ;;  %1447 = vmatpush.bf16.msra.mxu3 %v1628_v40 }
 0x469   : > { %v1228_v46 = vsel %vm527_vm5, %v1227_v53, %v1208_v41  ;;  %v1627_v41 = vld [vmem:[%s2287_s11 + $0x20] sm:$0xff] }
 0x46a   : > { %v1246_v49 = vsel %vm527_vm5, %v1238_v54, %v1245_v55  ;;  %v1243_v59 = vrot.slane %v1238_v54, 4  ;;  %v1234_v60 = vperm.slane %v1228_v46, %v1973_v58  ;;  %v1241_v63 = vrot.slane %v1222_v56, 4  ;;  %v1619_v58 = vld [vmem:[%s2281_s5] sm:$0xff] }
 0x46b   : > { %1256 = vrot.lane.b32.xlu0 %v1246_v49, %s1813_s24  ;;  %1295 = vmatpush.bf16.msra.mxu1 %v1619_v58  ;;  %s1478_s24 = sshll.u32 %s431_s23, 4  ;;  %s1479_s24 = int_to_ptr.vmem [resolvable:$true] %s1478_s24 }
 0x46c   : > { %v1244_v1 = vsel %vm527_vm5, %v1243_v59, %v1226_v50  ;;  %v1239_v2 = vrot.slane %v1234_v60, 4  ;;  %v1242_v3 = vsel %vm527_vm5, %v1234_v60, %v1241_v63  ;;  %1448 = vmatpush.bf16.msra.mxu3 %v1627_v41 }
 0x46d   : > { %1252 = vrot.lane.b32.xlu1 %v1244_v1, %s1814_s30  ;;  %1248 = vrot.lane.b32.xlu2 %v1242_v3, %s1815_s15  ;;  %s1614_s30 = sshll.u32 %s1907_s29, 3  ;;  %v1708_v1 = vld [vmem:[%s2288_s12] ss:$0 sm:$0xff]  ;;  %s1466_s29 = scalar_lea.sflag [#allocation3], %s429_s0 }
 0x46e   : > { %v1240_v4 = vsel %vm527_vm5, %v1239_v2, %v1222_v56  ;;  %s1476_s20 = scalar_lea.hbm %s2289_s13, %s1614_s30 }
 0x46f   : > { %s1480_s2 = sshll.u32 %s1476_s20, 4  ;;  %s1481_s2 = int_to_ptr.hbm [resolvable:$true] %s1480_s2 }
 0x470   : > { %1449 = vmatpush.bf16.msra.mxu3 %v1626_v42  ;;  %s1755_s3 = sshra.s32 %s1481_s2, 4  ;;  %s1756_s3 = int_to_ptr.hbm [resolvable:$true] %s1755_s3 }
 0x471   : > { %s1757_s30 = scalar_lea.hbm %s1756_s3, 8  ;;  %p1762_p0 = scmp.lt.s32.totalorder %s1756_s3, %s2289_s13 }
 0x472   : > { %p1758_p11 = scmp.ne.s32.totalorder %s1756_s3, %s1757_s30  ;;  %p1763_p1 = scmp.lt.s32.totalorder %s1761_s1, %s1757_s30 }
 0x474   : > { %1450 = vmatpush.bf16.msra.mxu3 %v1625_v43  ;;  %p1759_p12 = pnand %p1758_p11, %p1924_p5  ;;  %p1764_p2 = por %p1763_p1, %p1762_p0 }
 0x476   : > { %p1760_p13 = pneg %p1759_p12 }
 0x478   : > { %1451 = vmatpush.bf16.msra.mxu3 %v1624_v45  ;;  %p1765_p3 = pnand %p1764_p2, %p1760_p13 }
 0x47c   : > { %1452 = vmatpush.bf16.msra.mxu3 %v1623_v57 }
 0x4c7   : > { %v1249_v6 = vpop.permute.xlu2 %1248 }
 0x4c8   : > { %v1259_v7 = vsel %vm905_vm6, %v1240_v4, %v1249_v6 }
 0x4dd   : > { %v1257_v10 = vpop.permute.xlu0 %1256 }
 0x4df   : > { %v1253_v9 = vpop.permute.xlu1 %1252 }
 0x4e0   : > { %v1261_v11 = vsel %vm1260_vm9, %v1259_v7, %v1253_v9 }
 0x4e1   : > { %v1263_v12 = vsel %vm1262_vm10, %v1261_v11, %v1257_v10 }
 0x4e2   : > { %v1264_v13 = vpack.c.bf16 %v1263_v12, %v1263_v12 }
 0x4e4   : > { %1571 = vmatmul.msk.bf16.vlgmr.msra.gmra.mxu1 %vm440_vm0, %v1264_v13 }
 0x561   : > { %v1297_v15 = vpop.f32.mrf.mxu1 }
 0x562   : > { %v1298_v16 = vadd.f32 %v1704_v14, %v1297_v15 }
 0x564   : > { %v2191_v17 = vadd.f32 %v1298_v16, %v1939_v0  ;;  %v1621_v0 = vld [vmem:[%s2285_s9] sm:$0xff] }
 0x565   : > { %1365 = vmatpush.bf16.msra.mxu2 %v1621_v0 }
 0x566   : > { %v1304_v18 = vsel %vm440_vm0, %v2191_v17, 0.0 }
 0x567   : > { %1305 = vadd.xlane.f32.xlu2 %v1304_v18 }
 0x569   : > { %v1299_v19 = vpop.f32.mrf.mxu1 }
 0x5da   : > { %v1306_v20 = vpop.xlane.xlu2 %1305 }
 0x5db   : > { %v1307_v21 = vmul.f32 %v1306_v20, %v1943_v8 }
 0x5dd   : > { %v1308_v22 = vsub.f32 %v2191_v17, %v1307_v21 }
 0x5df   : > { %v1309_v23 = vmul.f32 %v1308_v22, %v1308_v22 }
 0x5e1   : > { %v1310_v24 = vsel %vm440_vm0, %v1309_v23, 0.0 }
 0x5e2   : > { %1311 = vadd.xlane.f32.xlu0 %v1310_v24 }
 0x655   : > { %v1312_v27 = vpop.xlane.xlu0 %1311 }
 0x656   : > { %v1313_v44 = vmul.f32 %v1312_v27, %v1943_v8  ;;  %v1705_v8 = vld [vmem:[%s2283_s7] ss:$0 sm:$0xff] }
 0x658   : > { %v1314_v62 = vadd.f32 1e-05, %v1313_v44 }
 0x65a   : > { %1737 = vrsqrt.f32 %v1314_v62  ;;  %vm1321_vm12 = vweird.f32 %v1314_v62 }
 0x660   : > { %v1738_v28 = vpop.eup %1737 }
 0x661   : > { %v1316_v29 = vmul.f32 %v1738_v28, %v1314_v62  ;;  %vm1322_vm11 = vweird.f32 %v1738_v28 }
 0x662   : > { %vm1323_vm13 = vmor %vm1321_vm12, %vm1322_vm11 }
 0x663   : > { %v1317_v30 = vmul.f32 %v1738_v28, %v1316_v29 }
 0x665   : > { %v1318_v31 = vmul.f32 0.5, %v1317_v30 }
 0x667   : > { %v1319_v33 = vsub.f32 1.5, %v1318_v31 }
 0x669   : > { %v1320_v34 = vmul.f32 %v1738_v28, %v1319_v33 }
 0x66b   : > { %v1324_v61 = vsel %vm1323_vm13, %v1738_v28, %v1320_v34 }
 0x66c   : > { %v1325_v32 = vmul.f32 %v1324_v61, %v1308_v22 }
 0x66e   : > { %v1329_v37 = vmul.f32 %v1705_v8, %v1325_v32 }
 0x670   : > { %v1333_v38 = vadd.f32 %v1706_v35, %v1329_v37 }
 0x672   : > { %v1334_v39 = vpack.c.bf16 %v1333_v38, %v1333_v38 }
 0x674   : > { %1580 = vmatmul.msk.bf16.vlgmr.msra.gmra.mxu2 %vm440_vm0, %v1334_v39 }
 0x6f7   : > { %v1367_v48 = vpop.f32.mrf.mxu2 }
 0x6f8   : > { %v1368_v50 = vadd.f32 %v1707_v47, %v1367_v48 }
 0x6fa   : > { %v1372_v51 = vmul.f32 0.044715, %v1368_v50  ;;  %v1371_v49 = vmul.f32 0.5, %v1368_v50 }
 0x6fc   : > { %v1373_v52 = vmul.f32 %v1372_v51, %v1368_v50 }
 0x6fe   : > { %v1374_v53 = vmul.f32 %v1373_v52, %v1368_v50 }
 0x6ff   : > { %v1369_v54 = vpop.f32.mrf.mxu2 }
 0x700   : > { %v1375_v55 = vadd.f32 %v1374_v53, %v1368_v50 }
 0x702   : > { %v1376_v56 = vmul.f32 0.7978846, %v1375_v55 }
 0x704   : > { %1739 = vtanh.f32 %v1376_v56 }
 0x70a   : > { %v1740_v46 = vpop.eup %1739 }
 0x70b   : > { %v1378_v59 = vadd.f32 1.0, %v1740_v46 }
 0x70d   : > { %v1379_v60 = vmul.f32 %v1378_v59, %v1371_v49 }
 0x70f   : > { %v1380_v63 = vpack.c.bf16 %v1379_v60, %v1379_v60 }
 0x711   : > { %1453 = vmatmul.bf16.vlgmr.msra.gmra.mxu3 %v1380_v63 }
 0x794   : > { %v1454_v2 = vpop.f32.mrf.mxu3 }
 0x795   : > { %v1458_v3 = vadd.f32 %v1454_v2, %v2191_v17 }
 0x797   : > { %v1463_v4 = vadd.f32 %v1708_v1, %v1458_v3 }
 0x799   : > { %1464 = vst.msk [vmem:[%s431_s23] sm:$0xff] %vm440_vm0, %v1463_v4 }
 0x79a   : > { %1768 = shalt.err (!%p1765_p3)
}
 0x79b   : > { %1631 = dma.vmem_to_hbm [thread:$0]  (%p1924_p5), %s1479_s24, 128, %s1481_s2, %s1466_s29  }
 0x79c   : > { %v1456_v5 = vpop.f32.mrf.mxu3 }
 0x79d PF: > { %p1637_p4 = scmp.ge.s32.totalorder %s1803_s28, 2  ;;  %s1492_s0 = sand.u32 1, %s1791_s25  }
 0x79e   : > { %s1493_s22 = scalar_lea.sflag [#allocation3], %s1492_s0 }
 0x79f   : > { %p1634_p7 = pnand %p1637_p4, %p1928_p6 }
 0x7a1   : > { %p1635_p8 = pneg %p1634_p7 }
 0x7a3   : > { %1786 = dma.done.wait (%p1635_p8), %s1493_s22, 128  }
 0x7a4   : > { %1788 = vsyncadd (%p1635_p8), %s1493_s22, 4294967168  ;;  %p23_p9 = scmp.ge.s32.totalorder %s1911_s14, 4   ;;  %s2300_s25 = smov %s1795_s26 }
 0x7a5   : > { %s2301_s26 = smov %s1799_s27  ;;  %s2302_s27 = smov %s1922_s17 }
 0x7a6   : > { %s2303_s28 = smov %s1911_s14  ;;  %25 = sbr.rel (!%p23_p9) target bundleno = 8 (0x8), region = 107 }
 0x7ab   :  { %1499 = vsyncpa [#allocation3], 1 }
 0x7ac   :  { %1501 = vsyncpa [#allocation3 + $0x1], 1 }

</bundles_post_ra>
